<compile_context>
chip_gen: v5e
topology: v5e:2x2
jax: 0.10.0
libtpu: 0.0.40
codegen_flags: <defaults>
</compile_context>

<pallas_src>
import jax
import jax.numpy as jnp
from jax import lax
from jax.experimental import pallas as pl
from jax.experimental.pallas import tpu as pltpu


def _bbox_transform_kernel(mean_ref, std_ref, boxes_ref, deltas_ref, out_ref):
    # boxes_ref / deltas_ref / out_ref block: (B, T) float32, where the lane
    # axis is the flattened (anchor, coord) stream: x1,y1,x2,y2,x1,y1,x2,y2,...
    # T is a multiple of 4, and every block starts at a multiple of 4, so the
    # 4-periodic coordinate pattern is identical in every block.
    blk = boxes_ref[...]      # interleaved x1,y1,x2,y2
    dlt = deltas_ref[...]     # interleaved dx,dy,dw,dh
    shape = blk.shape
    T = shape[-1]

    # lane index within the block; coordinate slot c = lane % 4
    lane = lax.broadcasted_iota(jnp.int32, shape, dimension=len(shape) - 1)
    c = lane & 3
    is_lo = c < 2             # x1 / y1 slots (outputs subtract half the size)

    # mean/std scalars from SMEM (read once), expanded to 4-periodic lane vecs.
    m0, m1, m2, m3 = mean_ref[0], mean_ref[1], mean_ref[2], mean_ref[3]
    s0, s1, s2, s3 = std_ref[0], std_ref[1], std_ref[2], std_ref[3]
    std_lane = jnp.where(is_lo, jnp.where(c == 0, s0, s1),
                         jnp.where(c == 2, s2, s3))
    mean_lane = jnp.where(is_lo, jnp.where(c == 0, m0, m1),
                          jnp.where(c == 2, m2, m3))

    dn = dlt * std_lane + mean_lane   # normalized deltas, still interleaved

    # "Partner" gather: each lane j needs the value at lane (j ^ 2) of the same
    # anchor's 4-group (x1<->x2, y1<->y2).  Build it from the two +-2 lane
    # rotations; rolling the lane-iota alongside the data tells us, per lane,
    # which rotation carried the right element.  This is independent of the
    # roll sign convention and of wraparound at the block edges (the wrapped
    # lanes are never selected).
    axis = len(shape) - 1
    roll_a = lambda x: pltpu.roll(x, 2, axis)
    roll_b = lambda x: pltpu.roll(x, T - 2, axis)
    use_a = roll_a(lane) == (lane ^ 2)

    b_partner = jnp.where(use_a, roll_a(blk), roll_b(blk))
    d_partner = jnp.where(use_a, roll_a(dn), roll_b(dn))

    p1 = jnp.where(is_lo, blk, b_partner)     # x1 (or y1) of this anchor
    p2 = jnp.where(is_lo, b_partner, blk)     # x2 (or y2) of this anchor
    size = p2 - p1                            # width on x slots, height on y
    ctr = p1 + 0.5 * size                     # ctr_x / ctr_y

    d_pos = jnp.where(is_lo, dn, d_partner)   # dx / dy (normalized)
    d_size = jnp.where(is_lo, d_partner, dn)  # dw / dh (normalized)

    pred_ctr = ctr + d_pos * size
    half = 0.5 * (jnp.exp(d_size) * size)     # exp on EUP (free slot)

    # Single full-tile store: x1',y1',x2',y2' interleaved, same layout as input.
    out_ref[...] = jnp.where(is_lo, pred_ctr - half, pred_ctr + half)


def bbox_transform(boxes, deltas, mean=None, std=None, *, tile_flat=65536):
    """Pallas equivalent of BBoxTransform.forward.

    boxes, deltas: float32 [B, N, 4] (same convention as the PyTorch module).
    Returns pred_boxes: float32 [B, N, 4].
    `tile_flat` = flat (anchor*coord) elements per grid step (multiple of 512).
    """
    if mean is None:
        mean = jnp.array([0.0, 0.0, 0.0, 0.0], dtype=jnp.float32)
    if std is None:
        std = jnp.array([0.1, 0.1, 0.2, 0.2], dtype=jnp.float32)
    mean = jnp.asarray(mean, jnp.float32)
    std = jnp.asarray(std, jnp.float32)

    boxes = jnp.asarray(boxes, jnp.float32)
    deltas = jnp.asarray(deltas, jnp.float32)
    B, N, C = boxes.shape
    assert C == 4 and deltas.shape == (B, N, 4)

    # Free reshape: collapse the trailing (N, 4) dims into one interleaved axis.
    Nf = N * 4
    boxes_f = boxes.reshape(B, Nf)
    deltas_f = deltas.reshape(B, Nf)

    # Tile selection: multiple of 512 (= 4 coords * 128 lanes) for lane-dense
    # DMA, capped to the data size and to a modest per-block VMEM footprint
    # (keeps 3 arrays x 2 pipeline buffers far below v5e/v7x scoped VMEM).
    if Nf >= 512:
        max_tile_vmem = max(512, ((2 * 1024 * 1024) // (4 * B)) // 512 * 512)
        tile = min((tile_flat // 512) * 512, (Nf // 512) * 512, max_tile_vmem)
        tile = max(tile, 512)
    else:
        tile = Nf  # tiny input: a single block covering the whole array

    num_blocks = pl.cdiv(Nf, tile)   # ragged last block handled by Pallas

    data_spec = pl.BlockSpec((B, tile), lambda i: (0, i))
    smem_spec = pl.BlockSpec(memory_space=pltpu.MemorySpace.SMEM)

    out_f = pl.pallas_call(
        _bbox_transform_kernel,
        out_shape=jax.ShapeDtypeStruct((B, Nf), jnp.float32),
        grid_spec=pltpu.PrefetchScalarGridSpec(
            num_scalar_prefetch=0,
            grid=(num_blocks,),
            in_specs=[smem_spec, smem_spec, data_spec, data_spec],
            out_specs=data_spec,
        ),
        compiler_params=pltpu.CompilerParams(
            dimension_semantics=("parallel",),
            vmem_limit_bytes=32 * 1024 * 1024,
        ),
        cost_estimate=pl.CostEstimate(
            flops=18 * B * N,
            transcendentals=2 * B * N,
            bytes_accessed=3 * B * N * 4 * 4,
        ),
    )(mean, std, boxes_f, deltas_f)

    # Free reshape back to [B, N, 4] (no transpose, no slice).
    return out_f.reshape(B, N, 4)


def _bbox_transform_ref(boxes, deltas, mean, std):
    """Pure-JAX reference reproducing the PyTorch forward."""
    widths = boxes[:, :, 2] - boxes[:, :, 0]
    heights = boxes[:, :, 3] - boxes[:, :, 1]
    ctr_x = boxes[:, :, 0] + 0.5 * widths
    ctr_y = boxes[:, :, 1] + 0.5 * heights
    dx = deltas[:, :, 0] * std[0] + mean[0]
    dy = deltas[:, :, 1] * std[1] + mean[1]
    dw = deltas[:, :, 2] * std[2] + mean[2]
    dh = deltas[:, :, 3] * std[3] + mean[3]
    pred_ctr_x = ctr_x + dx * widths
    pred_ctr_y = ctr_y + dy * heights
    pred_w = jnp.exp(dw) * widths
    pred_h = jnp.exp(dh) * heights
    return jnp.stack([pred_ctr_x - 0.5 * pred_w,
                      pred_ctr_y - 0.5 * pred_h,
                      pred_ctr_x + 0.5 * pred_w,
                      pred_ctr_y + 0.5 * pred_h], axis=2)


if __name__ == "__main__":
    key = jax.random.PRNGKey(0)
    k1, k2, k3 = jax.random.split(key, 3)

    B, N = 2, 200  # deliberately not a multiple of 128 to exercise the ragged block

    # Build valid boxes: x1 < x2, y1 < y2.
    xy1 = jax.random.uniform(k1, (B, N, 2), jnp.float32, 0.0, 50.0)
    wh = jax.random.uniform(k2, (B, N, 2), jnp.float32, 1.0, 30.0)
    boxes = jnp.concatenate([xy1, xy1 + wh], axis=2)          # [B, N, 4]
    deltas = jax.random.normal(k3, (B, N, 4), jnp.float32)    # [B, N, 4]

    mean = jnp.array([0.0, 0.0, 0.0, 0.0], dtype=jnp.float32)
    std = jnp.array([0.1, 0.1, 0.2, 0.2], dtype=jnp.float32)

    out = bbox_transform(boxes, deltas, mean, std)
    out = jax.block_until_ready(out)

    ref = _bbox_transform_ref(boxes, deltas, mean, std)
    assert out.shape == (B, N, 4)
    assert jnp.allclose(out, ref, atol=1e-4, rtol=1e-5), "mismatch vs reference"

    print("KERNEL_OK")
</pallas_src>

<mosaic_0001>
module attributes {stable_mosaic.version = 11 : i64} {
  func.func @_bbox_transform_kernel(%arg0: i32, %arg1: memref<4xf32, #tpu.memory_space<smem>>, %arg2: memref<4xf32, #tpu.memory_space<smem>>, %arg3: memref<2x512xf32, #tpu.memory_space<vmem>>, %arg4: memref<2x512xf32, #tpu.memory_space<vmem>>, %arg5: memref<2x512xf32, #tpu.memory_space<vmem>>) attributes {dimension_semantics = [#tpu.dimension_semantics<parallel>], iteration_bounds = array<i64: 2>, scalar_prefetch = 0 : i64, scratch_operands = 0 : i64, tpu.core_type = #tpu.core_type<tc>, window_params = [{transform_indices = @transform_0, window_bounds = array<i64: 4>}, {transform_indices = @transform_1, window_bounds = array<i64: 4>}, {transform_indices = @transform_2, window_bounds = array<i64: 2, 512>}, {transform_indices = @transform_3, window_bounds = array<i64: 2, 512>}, {transform_indices = @transform_4, window_bounds = array<i64: 2, 512>}]} {
    %c0 = arith.constant 0 : index
    %c0_0 = arith.constant 0 : index
    %0 = vector.load %arg3[%c0, %c0_0] : memref<2x512xf32, #tpu.memory_space<vmem>>, vector<2x512xf32>
    %c0_1 = arith.constant 0 : index
    %c0_2 = arith.constant 0 : index
    %1 = vector.load %arg4[%c0_1, %c0_2] : memref<2x512xf32, #tpu.memory_space<vmem>>, vector<2x512xf32>
    %2 = tpu.iota {dimensions = array<i32: 1>} : vector<2x512xi32>
    %c3_i32 = arith.constant 3 : i32
    %3 = vector.broadcast %c3_i32 : i32 to vector<2x512xi32>
    %4 = arith.andi %2, %3 : vector<2x512xi32>
    %c2_i32 = arith.constant 2 : i32
    %5 = vector.broadcast %c2_i32 : i32 to vector<2x512xi32>
    %6 = arith.cmpi slt, %4, %5 : vector<2x512xi32>
    %c0_3 = arith.constant 0 : index
    %7 = memref.load %arg1[%c0_3] : memref<4xf32, #tpu.memory_space<smem>>
    %c1 = arith.constant 1 : index
    %8 = memref.load %arg1[%c1] : memref<4xf32, #tpu.memory_space<smem>>
    %c2 = arith.constant 2 : index
    %9 = memref.load %arg1[%c2] : memref<4xf32, #tpu.memory_space<smem>>
    %c3 = arith.constant 3 : index
    %10 = memref.load %arg1[%c3] : memref<4xf32, #tpu.memory_space<smem>>
    %c0_4 = arith.constant 0 : index
    %11 = memref.load %arg2[%c0_4] : memref<4xf32, #tpu.memory_space<smem>>
    %c1_5 = arith.constant 1 : index
    %12 = memref.load %arg2[%c1_5] : memref<4xf32, #tpu.memory_space<smem>>
    %c2_6 = arith.constant 2 : index
    %13 = memref.load %arg2[%c2_6] : memref<4xf32, #tpu.memory_space<smem>>
    %c3_7 = arith.constant 3 : index
    %14 = memref.load %arg2[%c3_7] : memref<4xf32, #tpu.memory_space<smem>>
    %c0_i32 = arith.constant 0 : i32
    %15 = vector.broadcast %c0_i32 : i32 to vector<2x512xi32>
    %16 = arith.cmpi eq, %4, %15 : vector<2x512xi32>
    %17 = vector.broadcast %11 : f32 to vector<2x512xf32>
    %18 = vector.broadcast %12 : f32 to vector<2x512xf32>
    %19 = arith.select %16, %17, %18 : vector<2x512xi1>, vector<2x512xf32>
    %c2_i32_8 = arith.constant 2 : i32
    %20 = vector.broadcast %c2_i32_8 : i32 to vector<2x512xi32>
    %21 = arith.cmpi eq, %4, %20 : vector<2x512xi32>
    %22 = vector.broadcast %13 : f32 to vector<2x512xf32>
    %23 = vector.broadcast %14 : f32 to vector<2x512xf32>
    %24 = arith.select %21, %22, %23 : vector<2x512xi1>, vector<2x512xf32>
    %25 = arith.select %6, %19, %24 : vector<2x512xi1>, vector<2x512xf32>
    %c0_i32_9 = arith.constant 0 : i32
    %26 = vector.broadcast %c0_i32_9 : i32 to vector<2x512xi32>
    %27 = arith.cmpi eq, %4, %26 : vector<2x512xi32>
    %28 = vector.broadcast %7 : f32 to vector<2x512xf32>
    %29 = vector.broadcast %8 : f32 to vector<2x512xf32>
    %30 = arith.select %27, %28, %29 : vector<2x512xi1>, vector<2x512xf32>
    %c2_i32_10 = arith.constant 2 : i32
    %31 = vector.broadcast %c2_i32_10 : i32 to vector<2x512xi32>
    %32 = arith.cmpi eq, %4, %31 : vector<2x512xi32>
    %33 = vector.broadcast %9 : f32 to vector<2x512xf32>
    %34 = vector.broadcast %10 : f32 to vector<2x512xf32>
    %35 = arith.select %32, %33, %34 : vector<2x512xi1>, vector<2x512xf32>
    %36 = arith.select %6, %30, %35 : vector<2x512xi1>, vector<2x512xf32>
    %37 = arith.mulf %1, %25 : vector<2x512xf32>
    %38 = arith.addf %37, %36 : vector<2x512xf32>
    %c2_i32_11 = arith.constant 2 : i32
    %39 = tpu.dynamic_rotate %2 by %c2_i32_11 dim 1 : vector<2x512xi32>, i32 -> vector<2x512xi32>
    %c2_i32_12 = arith.constant 2 : i32
    %40 = vector.broadcast %c2_i32_12 : i32 to vector<2x512xi32>
    %41 = arith.xori %2, %40 : vector<2x512xi32>
    %42 = arith.cmpi eq, %39, %41 : vector<2x512xi32>
    %c2_i32_13 = arith.constant 2 : i32
    %43 = tpu.dynamic_rotate %0 by %c2_i32_13 dim 1 : vector<2x512xf32>, i32 -> vector<2x512xf32>
    %c510_i32 = arith.constant 510 : i32
    %44 = tpu.dynamic_rotate %0 by %c510_i32 dim 1 : vector<2x512xf32>, i32 -> vector<2x512xf32>
    %45 = arith.select %42, %43, %44 : vector<2x512xi1>, vector<2x512xf32>
    %c2_i32_14 = arith.constant 2 : i32
    %46 = tpu.dynamic_rotate %38 by %c2_i32_14 dim 1 : vector<2x512xf32>, i32 -> vector<2x512xf32>
    %c510_i32_15 = arith.constant 510 : i32
    %47 = tpu.dynamic_rotate %38 by %c510_i32_15 dim 1 : vector<2x512xf32>, i32 -> vector<2x512xf32>
    %48 = arith.select %42, %46, %47 : vector<2x512xi1>, vector<2x512xf32>
    %49 = arith.select %6, %0, %45 : vector<2x512xi1>, vector<2x512xf32>
    %50 = arith.select %6, %45, %0 : vector<2x512xi1>, vector<2x512xf32>
    %51 = arith.subf %50, %49 : vector<2x512xf32>
    %cst = arith.constant 5.000000e-01 : f32
    %52 = vector.broadcast %cst : f32 to vector<2x512xf32>
    %53 = arith.mulf %52, %51 : vector<2x512xf32>
    %54 = arith.addf %49, %53 : vector<2x512xf32>
    %55 = arith.select %6, %38, %48 : vector<2x512xi1>, vector<2x512xf32>
    %56 = arith.select %6, %48, %38 : vector<2x512xi1>, vector<2x512xf32>
    %57 = arith.mulf %55, %51 : vector<2x512xf32>
    %58 = arith.addf %54, %57 : vector<2x512xf32>
    %59 = math.exp %56 : vector<2x512xf32>
    %60 = arith.mulf %59, %51 : vector<2x512xf32>
    %cst_16 = arith.constant 5.000000e-01 : f32
    %61 = vector.broadcast %cst_16 : f32 to vector<2x512xf32>
    %62 = arith.mulf %61, %60 : vector<2x512xf32>
    %63 = arith.subf %58, %62 : vector<2x512xf32>
    %64 = arith.addf %58, %62 : vector<2x512xf32>
    %65 = arith.select %6, %63, %64 : vector<2x512xi1>, vector<2x512xf32>
    %c0_17 = arith.constant 0 : index
    %c0_18 = arith.constant 0 : index
    %66 = vector.load %arg5[%c0_17, %c0_18] : memref<2x512xf32, #tpu.memory_space<vmem>>, vector<2x512xf32>
    tpu.vector_store %arg5[%c0_17, %c0_18], %65 {strides = array<i32>} : memref<2x512xf32, #tpu.memory_space<vmem>>, vector<2x512xf32>,
    return
  }
  func.func @transform_0(%arg0: i32) -> i32 {
    %c0_i32 = arith.constant 0 : i32
    %c0_i32_0 = arith.constant 0 : i32
    return %c0_i32 : i32
  }
  func.func @transform_1(%arg0: i32) -> i32 {
    %c0_i32 = arith.constant 0 : i32
    %c0_i32_0 = arith.constant 0 : i32
    return %c0_i32 : i32
  }
  func.func @transform_2(%arg0: i32) -> (i32, i32) {
    %c0_i32 = arith.constant 0 : i32
    %c0_i32_0 = arith.constant 0 : i32
    return %c0_i32, %arg0 : i32, i32
  }
  func.func @transform_3(%arg0: i32) -> (i32, i32) {
    %c0_i32 = arith.constant 0 : i32
    %c0_i32_0 = arith.constant 0 : i32
    return %c0_i32, %arg0 : i32, i32
  }
  func.func @transform_4(%arg0: i32) -> (i32, i32) {
    %c0_i32 = arith.constant 0 : i32
    %c0_i32_0 = arith.constant 0 : i32
    return %c0_i32, %arg0 : i32, i32
  }
}

</mosaic_0001>

<bundles_post_ra>
// kernel: tpu_custom_call.1
= control target key start
LH: loop header
LB: loop body
LE: loop exit
PB: predicated region body
PF: predicated region fallthrough
CT: control target
= control target key end

     0   :  { %s1622_s0 = inlined_call_operand.hbm [shape: f32[4], index: 0, kind: input, shape index: {}]   ;;  %s1623_s1 = inlined_call_operand.hbm [shape: f32[4], index: 1, kind: input, shape index: {}]   ;;  %s1624_s2 = inlined_call_operand.hbm [shape: f32[2,800], index: 2, kind: input, shape index: {}]   ;;  %s1625_s3 = inlined_call_operand.hbm [shape: f32[2,800], index: 3, kind: input, shape index: {}]   ;;  %s1626_s4 = inlined_call_operand.hbm [shape: f32[2,800], index: 4, kind: output, shape index: {}]  }
   0x1   :  { %1630 = sst [smem:[#allocation18_spill]] %s1622_s0 }
   0x2   :  { %1631 = sst [smem:[#allocation19_spill]] %s1623_s1 }
   0x3   :  { %9 = vsyncpa [#allocation5], 0 }
   0x4   :  { %10 = vsyncpa [#allocation7], 0 }
   0x5   :  { %11 = vsyncpa [#allocation3], 0 }
   0x6   :  { %13 = vsyncpa [#allocation3 + $0x1], 0 }
   0x7   :  { %14 = vsyncpa [#allocation10], 0 }
   0x8   :  { %16 = vsyncpa [#allocation10 + $0x1], 0 }
   0x9   :  { %17 = vsyncpa [#allocation4], 0 }
   0xa   :  { %19 = vsyncpa [#allocation4 + $0x1], 0  ;;  %s1114_s15 = smov 0   ;;  %s1116_s16 = smov 0  }
   0xb   :  { %s1118_s17 = smov 0   ;;  %s1120_s18 = smov 0  }
   0xc LB: > { %s1135_s19 = sadd.s32 4294967295, %s1080_s18   ;;  %s769_s20 = sadd.s32 4294967294, %s1080_s18   ;;  %s1080_s18 = sphi %s1120_s18, %s1663_s18   ;;  %s1076_s17 = sphi %s1118_s17, %s1662_s17   ;;  %s1072_s16 = sphi %s1116_s16, %s1661_s16   ;;  %s1068_s15 = sphi %s1114_s15, %s1660_s15  }
   0xd   : > { %s1139_s21 = sadd.s32 1, %s1080_s18   ;;  %s74_s22 = sadd.s32 1, %s1076_s17 }
   0xe   : > { %s71_s23 = ssub.s32 %s1080_s18, %s1139_s21  ;;  %p81_p0 = scmp.ne.s32.totalorder %s1076_s17, %s1072_s16 }
   0xf   : > { %p72_p1 = scmp.eq.s32.totalorder %s71_s23, 0  ;;  %p82_p2 = scmp.eq.s32.totalorder %s1080_s18, 0 }
  0x10   : > { %p87_p3 = scmp.ne.s32.totalorder %s1072_s16, %s1068_s15  ;;  %p1628_p4 = scmp.eq.s32.totalorder %s1135_s19, 0 }
  0x11   : > { %s1151_s24 = scalar_select %p72_p1, %s1076_s17, %s74_s22  }
  0x12   : > { %p1153_p5 = por %p82_p2, %p81_p0  ;;  %p1159_p6 = por %p1628_p4, %p87_p3 }
  0x13   : > { %1632 = sst [smem:[#allocation17_spill]] %s1151_s24  ;;  %p137_p7 = scmp.eq.s32.totalorder %s1135_s19, 1 }
  0x14   : > { %p143_p8 = scmp.eq.s32.totalorder %s769_s20, 1  ;;  %p770_p9 = scmp.ge.s32.totalorder %s1080_s18, 1 }
  0x15   : > { %p150_p10 = scmp.lt.s32.totalorder %s1080_s18, 3  ;;  %p1166_p11 = por %p137_p7, %p81_p0 }
  0x16   : > { %p1170_p12 = por %p143_p8, %p87_p3  ;;  %s1638_s0 = sld [smem:[#allocation18_spill]] }
  0x17   : > { %s1635_s27 = scalar_select %p1166_p11, 1, 0 }
  0x18   : > { %s1636_s28 = scalar_select %p1170_p12, 1, 0 }
  0x19   : > { %p1174_p13 = pnand %p770_p9, %p150_p10  ;;  %s1639_s1 = sld [smem:[#allocation19_spill]] }
  0x1a   : > { %s1082_s10 = smov [#allocation2]   ;;  %s1083_s11 = smov [#allocation6]  }
  0x1b   : > { %p823_p1 = pneg %p1174_p13  ;;  %p1627_p2 = scmp.ge.s32.totalorder %s1080_s18, 2 }
  0x1c   : > { %s162_s6 = sshll.u32 %s1638_s0, 4  ;;  %s163_s6 = int_to_ptr.hbm [resolvable:$true] %s162_s6 }
  0x1d   : > { %p824_p0 = pnand %p823_p1, %p1628_p4  ;;  %179 = sbr.rel (%p1627_p2) target bundleno = 105 (0x69), region = 24 }
  0x1f   : > { %s172_s9 = sshll.u32 %s1639_s1, 4  ;;  %s173_s9 = int_to_ptr.hbm [resolvable:$true] %s172_s9 }
  0x20   : > { %826 = dma.hbm_to_smem (!%p824_p0), %s163_s6, 16, %s1082_s10, [#allocation5]  }
  0x21   : > { %829 = dma.hbm_to_smem (!%p824_p0), %s173_s9, 16, %s1083_s11, [#allocation7]  }
  0x22   : > { %182 = sbr.rel (!%p1153_p5) target bundleno = 70 (0x46), region = 28  ;;  %s183_s12 = sand.u32 (%p1153_p5), 1, %s1076_s17  }
  0x23   : > { %s775_s13 = sshll.u32 (%p1153_p5), %s1080_s18, 2  ;;  %s774_s14 = sshll.u32 (%p1153_p5), %s183_s12, 3 }
  0x24   : > { %s189_s20 = ssub.s32 (%p1153_p5), 7, %s775_s13  ;;  %s1198_s5 = scalar_lea.sflag (%p1153_p5), [#allocation3], %s183_s12 }
  0x25   : > { %p190_p3 = scmp.lt.s32.totalorder (%p1153_p5), %s189_s20, 4  ;;  %s187_s6 = scalar_lea.vmem (%p1153_p5), [#allocation8], %s774_s14 }
  0x27   : > { %s1665_s20 = smov (!%p190_p3, %s189_s20), 4 }
  0x28   : > { %s776_s22 = sshll.u32 %s1665_s20, 1 }
  0x29   : > { %s193_s23 = ssub.s32 8, %s776_s22 }
  0x2a   : > { %s194_s30 = sshll.u32 %s193_s23, 4 }
  0x2b   : > { %195 = vsyncadd %s1198_s5, %s194_s30  ;;  %p1201_p7 = scmp.ne.s32.totalorder %s776_s22, 0  ;;  %s809_s8 = sshll.u32 %s1080_s18, 3 }
  0x2c   : > { %s198_s11 = scalar_lea.hbm %s1624_s2, %s809_s8  ;;  %s1629_s13 = sshll.u32 %s1665_s20, 5 }
  0x2d   : > { %s201_s23 = sshll.u32 %s198_s11, 4  ;;  %s1210_s12 = sshll.u32 %s187_s6, 4  ;;  %s202_s23 = int_to_ptr.hbm [resolvable:$true] %s201_s23  ;;  %s204_s12 = int_to_ptr.vmem [resolvable:$true] %s1210_s12 }
  0x2e   : > { %s913_s14 = sshra.s32 %s202_s23, 4  ;;  %s915_s22 = sshrl.u32 %s1629_s13, 4  ;;  %s914_s14 = int_to_ptr.hbm [resolvable:$true] %s913_s14 }
  0x2f   : > { %s920_s30 = scalar_lea.hbm %s914_s14, %s915_s22  ;;  %s924_s8 = scalar_lea.hbm %s1624_s2, 14 }
  0x30   : > { %p921_p8 = scmp.ne.s32.totalorder %s914_s14, %s920_s30  ;;  %p925_p1 = scmp.lt.s32.totalorder %s914_s14, %s1624_s2 }
  0x31   : > { %p926_p0 = scmp.lt.s32.totalorder %s924_s8, %s920_s30 }
  0x32   : > { %p922_p9 = pnand %p921_p8, %p1201_p7 }
  0x33   : > { %p927_p3 = por %p926_p0, %p925_p1 }
  0x34   : > { %p923_p10 = pneg %p922_p9 }
  0x36   : > { %p928_p2 = pnand %p927_p3, %p923_p10 }
  0x38   : > { %931 = shalt.err (!%p928_p2)
}
  0x39   : > { %s932_s6 = sshra.s32 %s204_s12, 4  ;;  %s1084_s13 = smov [#allocation8]   ;;  %s933_s6 = int_to_ptr.vmem [resolvable:$true] %s932_s6 }
  0x3a   : > { %s939_s11 = scalar_lea.vmem %s933_s6, %s915_s22  ;;  %s943_s24 = scalar_lea.vmem %s1084_s13, 16 }
  0x3b   : > { %p940_p4 = scmp.ne.s32.totalorder %s933_s6, %s939_s11  ;;  %p945_p12 = scmp.lt.s32.totalorder %s943_s24, %s939_s11 }
  0x3d   : > { %p941_p8 = pnand %p940_p4, %p1201_p7 }
  0x3f   : > { %p942_p9 = pneg %p941_p8 }
  0x41   : > { %p947_p11 = pnand %p945_p12, %p942_p9 }
  0x43   : > { %950 = shalt.err (!%p947_p11)
}
  0x44   : > { %s1641_s0 = sshll.u32 %s1665_s20, 5 }
  0x45   : > { %206 = dma.hbm_to_vmem [thread:$0]  (%p1201_p7), %s202_s23, %s1641_s0, %s204_s12, %s1198_s5  }
  0x46 PF: > { %209 = sbr.rel (!%p1153_p5) target bundleno = 105 (0x69), region = 32  ;;  %s210_s1 = sand.u32 (%p1153_p5), 1, %s1076_s17  }
  0x47   : > { %s782_s14 = sshll.u32 (%p1153_p5), %s1080_s18, 2  ;;  %s781_s22 = sshll.u32 (%p1153_p5), %s210_s1, 3 }
  0x48   : > { %s216_s30 = ssub.s32 (%p1153_p5), 7, %s782_s14  ;;  %s1237_s8 = scalar_lea.sflag (%p1153_p5), [#allocation10], %s210_s1 }
  0x49   : > { %p217_p4 = scmp.lt.s32.totalorder (%p1153_p5), %s216_s30, 4  ;;  %s214_s20 = scalar_lea.vmem (%p1153_p5), [#allocation9], %s781_s22 }
  0x4b   : > { %s1667_s30 = smov (!%p217_p4, %s216_s30), 4 }
  0x4c   : > { %s783_s24 = sshll.u32 %s1667_s30, 1 }
  0x4d   : > { %s220_s7 = ssub.s32 8, %s783_s24 }
  0x4e   : > { %s221_s13 = sshll.u32 %s220_s7, 4 }
  0x4f   : > { %222 = vsyncadd %s1237_s8, %s221_s13  ;;  %p1240_p5 = scmp.ne.s32.totalorder %s783_s24, 0  ;;  %s810_s5 = sshll.u32 %s1080_s18, 3 }
  0x50   : > { %s225_s9 = scalar_lea.hbm %s1625_s3, %s810_s5  ;;  %s787_s10 = sshll.u32 %s1667_s30, 5 }
  0x51   : > { %s228_s6 = sshll.u32 %s225_s9, 4  ;;  %s1249_s11 = sshll.u32 %s214_s20, 4  ;;  %s229_s6 = int_to_ptr.hbm [resolvable:$true] %s228_s6  ;;  %s231_s11 = int_to_ptr.vmem [resolvable:$true] %s1249_s11 }
  0x52   : > { %s952_s0 = sshra.s32 %s229_s6, 4  ;;  %s954_s1 = sshrl.u32 %s787_s10, 4  ;;  %s953_s0 = int_to_ptr.hbm [resolvable:$true] %s952_s0 }
  0x53   : > { %s959_s14 = scalar_lea.hbm %s953_s0, %s954_s1  ;;  %s963_s7 = scalar_lea.hbm %s1625_s3, 14 }
  0x54   : > { %p960_p11 = scmp.ne.s32.totalorder %s953_s0, %s959_s14  ;;  %p964_p7 = scmp.lt.s32.totalorder %s953_s0, %s1625_s3 }
  0x55   : > { %p965_p10 = scmp.lt.s32.totalorder %s963_s7, %s959_s14 }
  0x56   : > { %p961_p12 = pnand %p960_p11, %p1240_p5 }
  0x57   : > { %p966_p1 = por %p965_p10, %p964_p7 }
  0x58   : > { %p962_p2 = pneg %p961_p12 }
  0x5a   : > { %p967_p0 = pnand %p966_p1, %p962_p2 }
  0x5c   : > { %970 = shalt.err (!%p967_p0)
}
  0x5d   : > { %s971_s20 = sshra.s32 %s231_s11, 4  ;;  %s1085_s12 = smov [#allocation9]   ;;  %s972_s20 = int_to_ptr.vmem [resolvable:$true] %s971_s20 }
  0x5e   : > { %s978_s23 = scalar_lea.vmem %s972_s20, %s954_s1  ;;  %s982_s9 = scalar_lea.vmem %s1085_s12, 16 }
  0x5f   : > { %p979_p3 = scmp.ne.s32.totalorder %s972_s20, %s978_s23  ;;  %p984_p4 = scmp.lt.s32.totalorder %s982_s9, %s978_s23 }
  0x61   : > { %p980_p8 = pnand %p979_p3, %p1240_p5 }
  0x63   : > { %p981_p9 = pneg %p980_p8 }
  0x65   : > { %p986_p11 = pnand %p984_p4, %p981_p9 }
  0x67   : > { %989 = shalt.err (!%p986_p11)
}
  0x68   : > { %233 = dma.hbm_to_vmem [thread:$0]  (%p1240_p5), %s229_s6, %s787_s10, %s231_s11, %s1237_s8  }
  0x69 PF: > { %239 = sbr.rel (%p1174_p13) target bundleno = 350 (0x15e), region = 36  ;;  %p1643_p12 = scmp.eq.s32.totalorder (!%p1174_p13), %s1135_s19, 0 }
  0x6e   : > { %1047 = dma.done.wait (%p1643_p12), [#allocation5], 16   ;;  %p1644_p2 = pmov %p1643_p12 }
  0x70   : > { %1049 = vsyncadd (%p1644_p2), [#allocation5], 4294967280  ;;  %p1645_p7 = pmov %p1644_p2 }
  0x71   : > { %p1646_p10 = pmov %p1644_p2 }
  0x72   : > { %1051 = dma.done.wait (%p1645_p7), [#allocation7], 16  }
  0x73   : > { %1053 = vsyncadd (%p1646_p10), [#allocation7], 4294967280  ;;  %s1280_s30 = sand.u32 1, %s1072_s16  }
  0x74   : > { %s1283_s29 = sshll.u32 %s1280_s30, 3  ;;  %s252_s8 = scalar_lea.sflag [#allocation3], %s1280_s30 }
  0x75   : > { %s255_s25 = scalar_lea.vmem [#allocation8], %s1283_s29 }
  0x76   : > { %1055 = dma.done.wait (%p1159_p6), %s252_s8, 128  }
  0x77   : > { %1057 = vsyncadd (%p1159_p6), %s252_s8, 4294967168  ;;  %s262_s10 = scalar_lea.sflag [#allocation10], %s1280_s30  ;;  %s265_s6 = scalar_lea.vmem [#allocation9], %s1283_s29 }
  0x78   : > { %1059 = dma.done.wait (%p1159_p6), %s262_s10, 128  }
  0x79   : > { %1061 = vsyncadd (%p1159_p6), %s262_s10, 4294967168 }
  0x7a   : > { %271 = sfence }
  0x7b   : > { %v314_v0 = vlaneseq  ;;  %s327_s11 = sld [smem:[#allocation2]]  ;;  %v1297_v1 = vld [vmem:[%s255_s25] sm:$0xff]  ;;  %s1086_s22 = smov 2   ;;  %vm382_vm6 = vcmask 1041408   ;;  %vm384_vm13 = vcmask 1045508   ;;  %vm386_vm14 = vcmask 1043456  }
  0x7c   : > { %s794_s0 = sld [smem:[#allocation2 + $0x1]]  ;;  %424 = vst [vmem:[#allocation1] ss:$4 sm:$0xff] %v1297_v1  ;;  %v313_v54 = vld [vmem:[%s265_s6] sm:$0xff]  ;;  %s1087_s5 = smov 126  }
  0x7d   : > { %v1299_v2 = vand.u32 127, %v314_v0  ;;  %s795_s1 = sld [smem:[#allocation2 + $0x2]]  ;;  %s296_s20 = scalar_lea.vmem [#allocation11], %s1283_s29 }
  0x7e   : > { %s796_s14 = sld [smem:[#allocation2 + $0x3]]  ;;  %s631_s23 = scalar_lea.sflag [#allocation4], %s1280_s30 }
  0x7f   : > { %402 = vrot.lane.b32.xlu0 %v1299_v2, %s1086_s22  ;;  %v1305_v3 = vadd.s32 256, %v1299_v2  ;;  %v1308_v4 = vand.u32 3, %v1299_v2  ;;  %s331_s26 = sld [smem:[#allocation6]]  ;;  %v1311_v5 = vadd.s32 128, %v1299_v2  ;;  %v1319_v6 = vadd.s32 384, %v1299_v2  ;;  %p1655_p6 = scmp.ne.s32.totalorder %s1635_s27, 0 }
  0x80   : > { %s797_s24 = sld [smem:[#allocation6 + $0x1]]  ;;  %vm410_vm15 = vcmp.lt.s32.totalorder %v1299_v2, 2  ;;  %s801_s12 = sshll.u32 (%p1655_p6), %s1135_s19, 2 }
  0x81   : > { %vm323_vm0 = vcmp.lt.s32.totalorder %v1308_v4, 2  ;;  %s1314_s7 = sld [smem:[#allocation6 + $0x2]]  ;;  %406 = vrot.lane.b32.xlu1 %v1305_v3, %s1086_s22  ;;  %vm335_vm1 = vcmp.eq.s32.totalorder %v1308_v4, 0  ;;  %v359_v7 = vstv %s327_s11  ;;  %v1325_v9 = vand.u32 3, %v1305_v3  ;;  %s639_s9 = ssub.s32 (%p1655_p6), 7, %s801_s12 }
  0x82   : > { %s1321_s13 = sld [smem:[#allocation6 + $0x3]]  ;;  %v360_v8 = vstv %s794_s0  ;;  %vm345_vm2 = vcmp.eq.s32.totalorder %v1308_v4, 2  ;;  %v1331_v12 = vand.u32 3, %v1311_v5  ;;  %v1347_v24 = vand.u32 3, %v1319_v6  ;;  %p640_p13 = scmp.lt.s32.totalorder (%p1655_p6), %s639_s9, 4 }
  0x83   : > { %v361_v10 = vsel %vm335_vm1, %v359_v7, %v360_v8  ;;  %v365_v11 = vstv %s795_s1  ;;  %vm325_vm3 = vcmp.lt.s32.totalorder %v1325_v9, 2  ;;  %vm337_vm4 = vcmp.eq.s32.totalorder %v1325_v9, 0  ;;  %v425_v14 = vld.sshfl [vmem:[#allocation1] sm:$0xff pattern:$0x73625140] }
  0x84   : > { %v366_v13 = vstv %s796_s14  ;;  %vm347_vm5 = vcmp.eq.s32.totalorder %v1325_v9, 2  ;;  %v363_v17 = vsel %vm337_vm4, %v359_v7, %v360_v8  ;;  %v427_v19 = vld.sshfl [vmem:[#allocation1 + $0x10] sm:$0xff pattern:$0x73625140]  ;;  %vm324_vm7 = vcmp.lt.s32.totalorder %v1331_v12, 2 }
  0x85   : > { %v339_v15 = vstv %s331_s26  ;;  %v367_v16 = vsel %vm345_vm2, %v365_v11, %v366_v13  ;;  %v369_v18 = vsel %vm347_vm5, %v365_v11, %v366_v13  ;;  %v426_v20 = vld.sshfl [vmem:[#allocation1 + $0x8] sm:$0xff pattern:$0x73625140]  ;;  %437 = vrot.lane.b32.xlu2 %v427_v19, %s1086_s22  ;;  %v1350_v25 = vld.sshfl [vmem:[#allocation1 + $0x18] sm:$0xff pattern:$0x73625140] }
  0x86   : > { %v340_v21 = vstv %s797_s24  ;;  %v373_v22 = vsel %vm325_vm3, %v363_v17, %v369_v18  ;;  %v371_v23 = vsel %vm323_vm0, %v361_v10, %v367_v16  ;;  %445 = vst [vmem:[#allocation1] ss:$4 sm:$0xff] %v1297_v1  ;;  %vm336_vm8 = vcmp.eq.s32.totalorder %v1331_v12, 0 }
  0x87   : > { %v341_v26 = vsel %vm335_vm1, %v339_v15, %v340_v21  ;;  %v349_v27 = vstv %s1314_s7  ;;  %v343_v28 = vsel %vm337_vm4, %v339_v15, %v340_v21  ;;  %404 = vrot.lane.b32.xlu0 %v1311_v5, %s1086_s22  ;;  %v395_v30 = vrot.slane %v373_v22, 4 }
  0x88   : > { %v350_v29 = vstv %s1321_s13  ;;  %vm346_vm9 = vcmp.eq.s32.totalorder %v1331_v12, 2  ;;  %v342_v33 = vsel %vm336_vm8, %v339_v15, %v340_v21  ;;  %v362_v37 = vsel %vm336_vm8, %v359_v7, %v360_v8 }
  0x89   : > { %v351_v31 = vsel %vm345_vm2, %v349_v27, %v350_v29  ;;  %v353_v32 = vsel %vm347_vm5, %v349_v27, %v350_v29  ;;  %v352_v34 = vsel %vm346_vm9, %v349_v27, %v350_v29  ;;  %408 = vrot.lane.b32.xlu1 %v1319_v6, %s1086_s22  ;;  %vm326_vm10 = vcmp.lt.s32.totalorder %v1347_v24, 2 }
  0x8a   : > { %v357_v35 = vsel %vm325_vm3, %v343_v28, %v353_v32  ;;  %v356_v36 = vsel %vm324_vm7, %v342_v33, %v352_v34  ;;  %v355_v38 = vsel %vm323_vm0, %v341_v26, %v351_v31  ;;  %v368_v39 = vsel %vm346_vm9, %v365_v11, %v366_v13 }
  0x8b   : > { %v379_v40 = vrot.slane %v356_v36, 6  ;;  %vm338_vm11 = vcmp.eq.s32.totalorder %v1347_v24, 0  ;;  %v372_v41 = vsel %vm324_vm7, %v362_v37, %v368_v39  ;;  %vm348_vm12 = vcmp.eq.s32.totalorder %v1347_v24, 2 }
  0x8c   : > { %v344_v42 = vsel %vm338_vm11, %v339_v15, %v340_v21  ;;  %v364_v43 = vsel %vm338_vm11, %v359_v7, %v360_v8  ;;  %v380_v44 = vrot.slane %v357_v35, 4  ;;  %v394_v45 = vrot.slane %v372_v41, 6 }
  0x8d   : > { %v354_v46 = vsel %vm348_vm12, %v349_v27, %v350_v29  ;;  %v370_v47 = vsel %vm348_vm12, %v365_v11, %v366_v13  ;;  %v383_v50 = vsel %vm382_vm6, %v355_v38, %v379_v40  ;;  %v446_v60 = vld.sshfl [vmem:[#allocation1] sm:$0xff pattern:$0x73625140]  ;;  %v447_v61 = vld.sshfl [vmem:[#allocation1 + $0x8] sm:$0xff pattern:$0x73625140] }
  0x8e   : > { %v358_v48 = vsel %vm326_vm10, %v344_v42, %v354_v46  ;;  %v374_v49 = vsel %vm326_vm10, %v364_v43, %v370_v47  ;;  %v397_v51 = vsel %vm382_vm6, %v371_v23, %v394_v45  ;;  %v448_v62 = vld.sshfl [vmem:[#allocation1 + $0x10] sm:$0xff pattern:$0x73625140]  ;;  %v449_v63 = vld.sshfl [vmem:[#allocation1 + $0x18] sm:$0xff pattern:$0x73625140] }
  0x8f   : > { %v381_v52 = vrot.slane %v358_v48, 2  ;;  %v396_v53 = vrot.slane %v374_v49, 2  ;;  %433 = vrot.lane.b32.xlu0 %v425_v14, %s1086_s22  ;;  %v415_v41 = vxor.u32 2, %v1299_v2  ;;  %v416_v43 = vxor.u32 2, %v1311_v5 }
  0x90   : > { %vm462_vm1 = vcmp.lt.s32.totalorder %v1299_v2, 126  ;;  %v418_v47 = vxor.u32 2, %v1319_v6 }
  0x91   : > { %v385_v55 = vsel %vm384_vm13, %v380_v44, %v381_v52  ;;  %v398_v56 = vsel %vm384_vm13, %v395_v30, %v396_v53  ;;  %435 = vrot.lane.b32.xlu1 %v426_v20, %s1086_s22 }
  0x92   : > { %v387_v57 = vsel %vm386_vm14, %v383_v50, %v385_v55  ;;  %v399_v58 = vsel %vm386_vm14, %v397_v51, %v398_v56  ;;  %v417_v50 = vxor.u32 2, %v1305_v3 }
  0x93   : > { %v389_v59 = vmul.f32 %v387_v57, %v313_v54 }
  0x95   : > { %v401_v0 = vadd.f32 %v399_v58, %v389_v59 }
  0x97   : > { %472 = vst [vmem:[#allocation1] ss:$4 sm:$0xff] %v401_v0 }
  0x9e   : > { %v475_v7 = vld.sshfl [vmem:[#allocation1 + $0x10] sm:$0xff pattern:$0x73625140]  ;;  %v474_v8 = vld.sshfl [vmem:[#allocation1 + $0x8] sm:$0xff pattern:$0x73625140] }
  0x9f   : > { %485 = vrot.lane.b32.xlu0 %v475_v7, %s1086_s22  ;;  %v476_v10 = vld.sshfl [vmem:[#allocation1 + $0x18] sm:$0xff pattern:$0x73625140]  ;;  %v473_v11 = vld.sshfl [vmem:[#allocation1] sm:$0xff pattern:$0x73625140] }
  0xa0   : > { %487 = vrot.lane.b32.xlu1 %v476_v10, %s1086_s22  ;;  %481 = vrot.lane.b32.xlu2 %v473_v11, %s1086_s22  ;;  %493 = vst [vmem:[#allocation1] ss:$4 sm:$0xff] %v401_v0 }
  0xa7   : > { %v495_v13 = vld.sshfl [vmem:[#allocation1 + $0x8] sm:$0xff pattern:$0x73625140]  ;;  %v496_v14 = vld.sshfl [vmem:[#allocation1 + $0x10] sm:$0xff pattern:$0x73625140] }
  0xa8   : > { %504 = vrot.lane.b32.xlu0 %v495_v13, %s1087_s5  ;;  %483 = vrot.lane.b32.xlu2 %v474_v8, %s1086_s22  ;;  %v494_v15 = vld.sshfl [vmem:[#allocation1] sm:$0xff pattern:$0x73625140]  ;;  %v497_v16 = vld.sshfl [vmem:[#allocation1 + $0x18] sm:$0xff pattern:$0x73625140] }
  0xa9   : > { %506 = vrot.lane.b32.xlu1 %v496_v14, %s1087_s5  ;;  %518 = vst [vmem:[#allocation1] ss:$4 sm:$0xff] %v1297_v1 }
  0xb0   : > { %439 = vrot.lane.b32.xlu0 %v1350_v25, %s1086_s22  ;;  %502 = vrot.lane.b32.xlu2 %v494_v15, %s1087_s5  ;;  %v1402_v17 = vld.sshfl [vmem:[#allocation1] sm:$0xff pattern:$0x73625140]  ;;  %v1404_v18 = vld.sshfl [vmem:[#allocation1 + $0x8] sm:$0xff pattern:$0x73625140] }
  0xb1   : > { %454 = vrot.lane.b32.xlu1 %v446_v60, %s1087_s5  ;;  %v1406_v19 = vld.sshfl [vmem:[#allocation1 + $0x10] sm:$0xff pattern:$0x73625140]  ;;  %v1408_v20 = vld.sshfl [vmem:[#allocation1 + $0x18] sm:$0xff pattern:$0x73625140] }
  0xb2   : > { %531 = vst [vmem:[#allocation1] ss:$4 sm:$0xff] %v1297_v1 }
  0xb8   : > { %458 = vrot.lane.b32.xlu0 %v448_v62, %s1087_s5  ;;  %508 = vrot.lane.b32.xlu2 %v497_v16, %s1087_s5 }
  0xb9   : > { %460 = vrot.lane.b32.xlu1 %v449_v63, %s1087_s5  ;;  %v1411_v21 = vld.sshfl [vmem:[#allocation1] sm:$0xff pattern:$0x73625140]  ;;  %v1413_v22 = vld.sshfl [vmem:[#allocation1 + $0x8] sm:$0xff pattern:$0x73625140] }
  0xba   : > { %v1415_v23 = vld.sshfl [vmem:[#allocation1 + $0x10] sm:$0xff pattern:$0x73625140]  ;;  %v1417_v25 = vld.sshfl [vmem:[#allocation1 + $0x18] sm:$0xff pattern:$0x73625140] }
  0xbb   : > { %556 = vst [vmem:[#allocation1] ss:$4 sm:$0xff] %v401_v0 }
  0xc0   : > { %456 = vrot.lane.b32.xlu2 %v447_v61, %s1087_s5 }
  0xc2   : > { %v1419_v26 = vld.sshfl [vmem:[#allocation1] sm:$0xff pattern:$0x73625140]  ;;  %v1421_v27 = vld.sshfl [vmem:[#allocation1 + $0x8] sm:$0xff pattern:$0x73625140] }
  0xc3   : > { %v1423_v28 = vld.sshfl [vmem:[#allocation1 + $0x10] sm:$0xff pattern:$0x73625140]  ;;  %v1425_v1 = vld.sshfl [vmem:[#allocation1 + $0x18] sm:$0xff pattern:$0x73625140] }
  0xc4   : > { %569 = vst [vmem:[#allocation1] ss:$4 sm:$0xff] %v401_v0 }
  0xcb   : > { %v570_v58 = vld.sshfl [vmem:[#allocation1] sm:$0xff pattern:$0x73625140]  ;;  %v571_v62 = vld.sshfl [vmem:[#allocation1 + $0x8] sm:$0xff pattern:$0x73625140] }
  0xcc   : > { %v573_v8 = vld.sshfl [vmem:[#allocation1 + $0x18] sm:$0xff pattern:$0x73625140]  ;;  %v572_v13 = vld.sshfl [vmem:[#allocation1 + $0x10] sm:$0xff pattern:$0x73625140] }
  0xdf   : > { %v1427_v29 = vpop.permute.xlu2 %437 }
  0xf1   : > { %v403_v30 = vpop.permute.xlu0 %402 }
  0xf3   : > { %v407_v31 = vpop.permute.xlu1 %406 }
  0xf9   : > { %v405_v33 = vpop.permute.xlu0 %404 }
  0xfa   : > { %v482_v32 = vpop.permute.xlu2 %481  ;;  %v413_v46 = vsel %vm410_vm15, %v403_v30, %v405_v33  ;;  %v412_v5 = vsel %vm410_vm15, %v405_v33, %v407_v31 }
  0xfb   : > { %v409_v34 = vpop.permute.xlu1 %408  ;;  %vm1457_vm4 = vcmp.eq.s32.totalorder %v413_v46, %v416_v43  ;;  %vm1473_vm8 = vcmp.eq.s32.totalorder %v412_v5, %v417_v50 }
  0xfc   : > { %v414_v44 = vsel %vm410_vm15, %v409_v34, %v403_v30  ;;  %v411_v51 = vsel %vm410_vm15, %v407_v31, %v409_v34 }
  0xfd   : > { %vm1447_vm2 = vcmp.eq.s32.totalorder %v414_v44, %v415_v41  ;;  %vm1467_vm5 = vcmp.eq.s32.totalorder %v411_v51, %v418_v47 }
 0x101   : > { %v434_v36 = vpop.permute.xlu0 %433 }
 0x102   : > { %v484_v35 = vpop.permute.xlu2 %483 }
 0x103   : > { %v436_v37 = vpop.permute.xlu1 %435  ;;  %v491_v56 = vsel %vm410_vm15, %v482_v32, %v484_v35 }
 0x104   : > { %v442_v46 = vsel %vm410_vm15, %v436_v37, %v1427_v29 }
 0x10a   : > { %v503_v38 = vpop.permute.xlu2 %502 }
 0x111   : > { %v486_v39 = vpop.permute.xlu0 %485 }
 0x112   : > { %v488_v40 = vpop.permute.xlu1 %487  ;;  %v509_v42 = vpop.permute.xlu2 %508  ;;  %v490_v0 = vsel %vm410_vm15, %v484_v35, %v486_v39 }
 0x113   : > { %v489_v6 = vsel %vm410_vm15, %v486_v39, %v488_v40  ;;  %v492_v54 = vsel %vm410_vm15, %v488_v40, %v482_v32  ;;  %v513_v3 = vsel %vm462_vm1, %v509_v42, %v503_v38 }
 0x114   : > { %v517_v7 = vsel %vm1467_vm5, %v489_v6, %v513_v3 }
 0x115   : > { %v581_v30 = vsel %vm326_vm10, %v517_v7, %v573_v8 }
 0x116   : > { %v596_v40 = vmul.f32 1.442695, %v581_v30 }
 0x11a   : > { %v505_v45 = vpop.permute.xlu0 %504  ;;  %v457_v14 = vpop.permute.xlu2 %456 }
 0x11b   : > { %v512_v48 = vsel %vm462_vm1, %v503_v38, %v505_v45  ;;  %v507_v49 = vpop.permute.xlu1 %506 }
 0x11c   : > { %v511_v52 = vsel %vm462_vm1, %v505_v45, %v507_v49  ;;  %v514_v57 = vsel %vm1447_vm2, %v492_v54, %v512_v48  ;;  %v510_v59 = vsel %vm462_vm1, %v507_v49, %v509_v42  ;;  %v443_v48 = vsel %vm410_vm15, %v434_v36, %v436_v37 }
 0x11d   : > { %v515_v61 = vsel %vm1457_vm4, %v491_v56, %v511_v52  ;;  %v578_v10 = vsel %vm323_vm0, %v514_v57, %v570_v58  ;;  %v516_v11 = vsel %vm1473_vm8, %v490_v0, %v510_v59 }
 0x11e   : > { %v579_v15 = vsel %vm324_vm7, %v515_v61, %v571_v62  ;;  %v590_v32 = vmul.f32 1.442695, %v578_v10  ;;  %v580_v33 = vsel %vm325_vm3, %v516_v11, %v572_v13  ;;  %v566_v63 = vsel %vm324_vm7, %v1421_v27, %v515_v61 }
 0x11f   : > { %v592_v38 = vmul.f32 1.442695, %v579_v15  ;;  %v594_v43 = vmul.f32 1.442695, %v580_v33 }
 0x120   : > { %875 = vpow2.f32 %v590_v32 }
 0x121   : > { %877 = vpow2.f32 %v592_v38 }
 0x122   : > { %v440_v16 = vpop.permute.xlu0 %439  ;;  %879 = vpow2.f32 %v596_v40 }
 0x123   : > { %v455_v31 = vpop.permute.xlu1 %454  ;;  %v444_v34 = vsel %vm410_vm15, %v440_v16, %v434_v36  ;;  %881 = vpow2.f32 %v594_v43  ;;  %v441_v50 = vsel %vm410_vm15, %v1427_v29, %v440_v16 }
 0x124   : > { %v465_v35 = vsel %vm462_vm1, %v455_v31, %v457_v14 }
 0x125   : > { %v467_v39 = vsel %vm1447_vm2, %v444_v34, %v465_v35 }
 0x126   : > { %v527_v41 = vsel %vm323_vm0, %v1402_v17, %v467_v39  ;;  %v540_v42 = vsel %vm323_vm0, %v467_v39, %v1411_v21  ;;  %v565_v17 = vsel %vm323_vm0, %v1419_v26, %v514_v57  ;;  %v876_v53 = vpop.eup %875 }
 0x127   : > { %v544_v44 = vsub.f32 %v540_v42, %v527_v41  ;;  %v878_v3 = vpop.eup %877 }
 0x128   : > { %v880_v58 = vpop.eup %879 }
 0x129   : > { %v548_v45 = vmul.f32 0.5, %v544_v44  ;;  %v582_v55 = vmul.f32 %v565_v17, %v544_v44  ;;  %v598_v56 = vmul.f32 %v876_v53, %v544_v44 }
 0x12a   : > { %v459_v47 = vpop.permute.xlu0 %458 }
 0x12b   : > { %v464_v21 = vsel %vm462_vm1, %v457_v14, %v459_v47  ;;  %v461_v49 = vpop.permute.xlu1 %460  ;;  %v552_v37 = vadd.f32 %v548_v45, %v527_v41  ;;  %v602_v14 = vmul.f32 0.5, %v598_v56 }
 0x12c   : > { %v468_v5 = vsel %vm1457_vm4, %v443_v48, %v464_v21  ;;  %v463_v51 = vsel %vm462_vm1, %v459_v47, %v461_v49  ;;  %v466_v36 = vsel %vm462_vm1, %v461_v49, %v455_v31 }
 0x12d   : > { %v528_v26 = vsel %vm324_vm7, %v1404_v18, %v468_v5  ;;  %v541_v52 = vsel %vm324_vm7, %v468_v5, %v1413_v22  ;;  %v469_v29 = vsel %vm1473_vm8, %v442_v46, %v463_v51  ;;  %v470_v54 = vsel %vm1467_vm5, %v441_v50, %v466_v36 }
 0x12e   : > { %v545_v6 = vsub.f32 %v541_v52, %v528_v26  ;;  %v529_v2 = vsel %vm325_vm3, %v1406_v19, %v469_v29  ;;  %v542_v18 = vsel %vm325_vm3, %v469_v29, %v1415_v23  ;;  %v530_v22 = vsel %vm326_vm10, %v1408_v20, %v470_v54  ;;  %v882_v19 = vpop.eup %881 }
 0x12f   : > { %v543_v57 = vsel %vm326_vm10, %v470_v54, %v1417_v25  ;;  %v546_v62 = vsub.f32 %v542_v18, %v529_v2  ;;  %v568_v23 = vsel %vm326_vm10, %v1425_v1, %v517_v7  ;;  %v586_v0 = vadd.f32 %v582_v55, %v552_v37 }
 0x130   : > { %v549_v59 = vmul.f32 0.5, %v545_v6  ;;  %v599_v60 = vmul.f32 %v878_v3, %v545_v6  ;;  %v547_v8 = vsub.f32 %v543_v57, %v530_v22  ;;  %v567_v20 = vsel %vm325_vm3, %v1423_v28, %v516_v11 }
 0x131   : > { %v583_v10 = vmul.f32 %v566_v63, %v545_v6  ;;  %v550_v13 = vmul.f32 0.5, %v546_v62  ;;  %v600_v16 = vmul.f32 %v882_v19, %v546_v62  ;;  %v584_v7 = vmul.f32 %v567_v20, %v546_v62 }
 0x132   : > { %v553_v25 = vadd.f32 %v549_v59, %v528_v26  ;;  %v551_v15 = vmul.f32 0.5, %v547_v8  ;;  %v601_v30 = vmul.f32 %v880_v58, %v547_v8  ;;  %v603_v32 = vmul.f32 0.5, %v599_v60 }
 0x133   : > { %v554_v1 = vadd.f32 %v550_v13, %v529_v2  ;;  %v606_v33 = vsub.f32 %v586_v0, %v602_v14  ;;  %v610_v34 = vadd.f32 %v602_v14, %v586_v0  ;;  %v585_v61 = vmul.f32 %v568_v23, %v547_v8 }
 0x134   : > { %v587_v31 = vadd.f32 %v583_v10, %v553_v25  ;;  %v555_v27 = vadd.f32 %v551_v15, %v530_v22  ;;  %v604_v40 = vmul.f32 0.5, %v600_v16  ;;  %v605_v11 = vmul.f32 0.5, %v601_v30 }
 0x135   : > { %v588_v39 = vadd.f32 %v584_v7, %v554_v1  ;;  %v614_v47 = vsel %vm323_vm0, %v606_v33, %v610_v34 }
 0x136   : > { %v607_v35 = vsub.f32 %v587_v31, %v603_v32  ;;  %v611_v38 = vadd.f32 %v603_v32, %v587_v31  ;;  %v589_v28 = vadd.f32 %v585_v61, %v555_v27 }
 0x137   : > { %v608_v42 = vsub.f32 %v588_v39, %v604_v40  ;;  %v612_v43 = vadd.f32 %v604_v40, %v588_v39 }
 0x138   : > { %v615_v41 = vsel %vm324_vm7, %v607_v35, %v611_v38  ;;  %v609_v45 = vsub.f32 %v589_v28, %v605_v11  ;;  %v613_v46 = vadd.f32 %v605_v11, %v589_v28 }
 0x139   : > { %v622_v44 = vrot.slane %v615_v41, 6  ;;  %v616_v48 = vsel %vm325_vm3, %v608_v42, %v612_v43 }
 0x13a   : > { %v617_v21 = vsel %vm326_vm10, %v609_v45, %v613_v46  ;;  %v623_v49 = vrot.slane %v616_v48, 4 }
 0x13b   : > { %v625_v17 = vsel %vm382_vm6, %v614_v47, %v622_v44  ;;  %v624_v12 = vrot.slane %v617_v21, 2  ;;  %637 = sbr.rel (!%p1655_p6) target bundleno = 350 (0x15e), region = 56 }
 0x13d   : > { %v626_v50 = vsel %vm384_vm13, %v623_v49, %v624_v12 }
 0x13e   : > { %v627_v5 = vsel %vm386_vm14, %v625_v17, %v626_v50 }
 0x13f   : > { %629 = vst [vmem:[%s296_s20] sm:$0xff] %v627_v5 }
 0x140   : > { %s1669_s9 = smov (!%p640_p13, %s639_s9), 4 }
 0x141   : > { %s802_s8 = sshll.u32 %s1669_s9, 1 }
 0x142   : > { %s643_s25 = ssub.s32 8, %s802_s8 }
 0x143   : > { %s644_s10 = sshll.u32 %s643_s25, 4 }
 0x144   : > { %645 = vsyncadd %s631_s23, %s644_s10  ;;  %p1574_p5 = scmp.ne.s32.totalorder %s802_s8, 0  ;;  %s811_s27 = sshll.u32 %s1135_s19, 3 }
 0x145   : > { %s648_s0 = scalar_lea.hbm %s1626_s4, %s811_s27  ;;  %s806_s1 = sshll.u32 %s1669_s9, 5 }
 0x146   : > { %s1583_s14 = sshll.u32 %s296_s20, 4  ;;  %s653_s22 = sshll.u32 %s648_s0, 4  ;;  %s652_s14 = int_to_ptr.vmem [resolvable:$true] %s1583_s14  ;;  %s654_s22 = int_to_ptr.hbm [resolvable:$true] %s653_s22 }
 0x147   : > { %s991_s26 = sshra.s32 %s652_s14, 4  ;;  %s993_s24 = sshrl.u32 %s806_s1, 4  ;;  %s992_s26 = int_to_ptr.vmem [resolvable:$true] %s991_s26 }
 0x148   : > { %s998_s7 = scalar_lea.vmem %s992_s26, %s993_s24  ;;  %s1088_s19 = smov [#allocation11]  }
 0x149   : > { %p999_p1 = scmp.ne.s32.totalorder %s992_s26, %s998_s7  ;;  %s1002_s13 = scalar_lea.vmem %s1088_s19, 16 }
 0x14a   : > { %p1004_p8 = scmp.lt.s32.totalorder %s1002_s13, %s998_s7 }
 0x14b   : > { %p1000_p0 = pnand %p999_p1, %p1574_p5 }
 0x14d   : > { %p1001_p3 = pneg %p1000_p0 }
 0x14f   : > { %p1006_p9 = pnand %p1004_p8, %p1001_p3 }
 0x151   : > { %1009 = shalt.err (!%p1006_p9)
}
 0x152   : > { %s1010_s5 = sshra.s32 %s654_s22, 4  ;;  %s1021_s25 = scalar_lea.hbm %s1626_s4, 14  ;;  %s1011_s5 = int_to_ptr.hbm [resolvable:$true] %s1010_s5 }
 0x153   : > { %s1017_s20 = scalar_lea.hbm %s1011_s5, %s993_s24  ;;  %p1022_p2 = scmp.lt.s32.totalorder %s1011_s5, %s1626_s4 }
 0x154   : > { %p1018_p4 = scmp.ne.s32.totalorder %s1011_s5, %s1017_s20  ;;  %p1023_p7 = scmp.lt.s32.totalorder %s1021_s25, %s1017_s20 }
 0x156   : > { %p1019_p11 = pnand %p1018_p4, %p1574_p5  ;;  %p1024_p10 = por %p1023_p7, %p1022_p2 }
 0x158   : > { %p1020_p12 = pneg %p1019_p11 }
 0x15a   : > { %p1025_p6 = pnand %p1024_p10, %p1020_p12 }
 0x15c   : > { %1028 = shalt.err (!%p1025_p6)
}
 0x15d   : > { %656 = dma.vmem_to_hbm [thread:$0]  (%p1574_p5), %s652_s14, %s806_s1, %s654_s22, %s631_s23  }
 0x15e PF: > { %s665_s6 = sand.u32 1, %s1068_s15   ;;  %p1657_p13 = scmp.ne.s32.totalorder %s1636_s28, 0 }
 0x15f   : > { %p1658_p1 = scmp.ge.s32.totalorder %s1080_s18, 2  ;;  %s666_s11 = scalar_lea.sflag [#allocation4], %s665_s6 }
 0x161   : > { %p831_p0 = pnand %p1658_p1, %p1657_p13 }
 0x163   : > { %p832_p3 = pneg %p831_p0 }
 0x165   : > { %1063 = dma.done.wait (%p832_p3), %s666_s11, 128  }
 0x166   : > { %1065 = vsyncadd (%p832_p3), %s666_s11, 4294967168  ;;  %s1659_s30 = sld [smem:[#allocation17_spill]]  ;;  %p22_p8 = scmp.ge.s32.totalorder %s1139_s21, 4  }
 0x167   : > { %s1660_s15 = smov %s1072_s16  ;;  %s1661_s16 = smov %s1076_s17 }
 0x168   : > { %s1663_s18 = smov %s1139_s21  ;;  %24 = sbr.rel (!%p22_p8) target bundleno = 12 (0xc), region = 103 }
 0x16c   : > { %s1662_s17 = smov %s1659_s30 }
 0x16d   :  { %672 = vsyncpa [#allocation3], 1 }
 0x16e   :  { %674 = vsyncpa [#allocation3 + $0x1], 1 }
 0x16f   :  { %675 = vsyncpa [#allocation10], 1 }
 0x170   :  { %677 = vsyncpa [#allocation10 + $0x1], 1 }
 0x171   :  { %678 = vsyncpa [#allocation4], 1 }
 0x172   :  { %680 = vsyncpa [#allocation4 + $0x1], 1 }
 0x173   :  { %681 = vsyncpa [#allocation5], 1 }
 0x174   :  { %683 = vsyncpa [#allocation5 + $0x1], 1 }
 0x175   :  { %684 = vsyncpa [#allocation7], 1 }

</bundles_post_ra>
